<compile_context>
chip_gen: v7x
topology: tpu7x:2x2x1
jax: 0.10.0
libtpu: 0.0.40
codegen_flags: <defaults>
</compile_context>

<pallas_src>
import jax
import jax.numpy as jnp
from jax.experimental import pallas as pl
from jax.experimental.pallas import tpu as pltpu  # noqa: F401  (TPU backend)


def _folded_mul_kernel(m_ref, a_ref, o_ref):
    # Single unmasked full-block load/multiply/store — one VPU op total.
    o_ref[...] = m_ref[...] * a_ref[...]


def context_constant_folding_forward(a, ma, mb, mc, md, me, mf, mg):
    """Fold the 7 constant params into one matrix, then run a 2-input kernel."""
    # "Constant folding": done once at trace/jit time, outside the Pallas call,
    # where XLA can constant-fold / fuse it for free.
    m = mg * mf * me * md * mc * mb * ma

    shape = a.shape
    spec = pl.BlockSpec(shape, lambda: (0,) * len(shape))
    itemsize = jnp.dtype(a.dtype).itemsize
    return pl.pallas_call(
        _folded_mul_kernel,
        out_shape=jax.ShapeDtypeStruct(shape, a.dtype),
        grid=(),
        in_specs=[spec, spec],
        out_specs=spec,
        cost_estimate=pl.CostEstimate(
            flops=a.size,
            transcendentals=0,
            bytes_accessed=3 * a.size * itemsize,
        ),
    )(m, a)


if __name__ == "__main__":
    key = jax.random.PRNGKey(0)
    keys = jax.random.split(key, 8)

    # Deterministic parameter init, analogous to torch.rand(3, 3) (uniform [0, 1)).
    ma = jax.random.uniform(keys[0], (3, 3), dtype=jnp.float32)
    mb = jax.random.uniform(keys[1], (3, 3), dtype=jnp.float32)
    mc = jax.random.uniform(keys[2], (3, 3), dtype=jnp.float32)
    md = jax.random.uniform(keys[3], (3, 3), dtype=jnp.float32)
    me = jax.random.uniform(keys[4], (3, 3), dtype=jnp.float32)
    mf = jax.random.uniform(keys[5], (3, 3), dtype=jnp.float32)
    mg = jax.random.uniform(keys[6], (3, 3), dtype=jnp.float32)

    # Example input `a`, same shape as the (3, 3) parameters (as in the module).
    a = jax.random.uniform(keys[7], (3, 3), dtype=jnp.float32)

    fwd = jax.jit(context_constant_folding_forward)
    out = fwd(a, ma, mb, mc, md, me, mf, mg)
    out = jax.block_until_ready(out)

    # Reference in the original left-to-right association order.
    ref = mg * (mf * (me * (md * (mc * (mb * (ma * a))))))
    assert jnp.allclose(out, ref, atol=1e-6, rtol=1e-6), "mismatch vs. reference"

    print("KERNEL_OK")
</pallas_src>

<mosaic_0001>
module attributes {stable_mosaic.version = 11 : i64} {
  func.func @_folded_mul_kernel(%arg0: memref<3x3xf32, #tpu.memory_space<vmem>>, %arg1: memref<3x3xf32, #tpu.memory_space<vmem>>, %arg2: memref<3x3xf32, #tpu.memory_space<vmem>>) attributes {dimension_semantics = [], scalar_prefetch = 0 : i64, scratch_operands = 0 : i64, tpu.core_type = #tpu.core_type<tc>} {
    %c0 = arith.constant 0 : index
    %c0_0 = arith.constant 0 : index
    %0 = vector.load %arg0[%c0, %c0_0] : memref<3x3xf32, #tpu.memory_space<vmem>>, vector<3x3xf32>
    %c0_1 = arith.constant 0 : index
    %c0_2 = arith.constant 0 : index
    %1 = vector.load %arg1[%c0_1, %c0_2] : memref<3x3xf32, #tpu.memory_space<vmem>>, vector<3x3xf32>
    %2 = arith.mulf %0, %1 : vector<3x3xf32>
    %c0_3 = arith.constant 0 : index
    %c0_4 = arith.constant 0 : index
    %3 = vector.load %arg2[%c0_3, %c0_4] : memref<3x3xf32, #tpu.memory_space<vmem>>, vector<3x3xf32>
    tpu.vector_store %arg2[%c0_3, %c0_4], %2 {strides = array<i32>} : memref<3x3xf32, #tpu.memory_space<vmem>>, vector<3x3xf32>,
    return
  }
}

</mosaic_0001>

<bundles_post_ra>
// kernel: context_constant_folding_forward.1
= control target key start
LH: loop header
LB: loop body
LE: loop exit
PB: predicated region body
PF: predicated region fallthrough
CT: control target
= control target key end

     0   :  { %vm15_vm0 = vcmask 18432   ;;  %s90_s0 = inlined_call_operand.vmem [shape: f32[3,3], index: 0, kind: input, shape index: {}]   ;;  %s91_s1 = inlined_call_operand.vmem [shape: f32[3,3], index: 1, kind: input, shape index: {}]   ;;  %s92_s2 = inlined_call_operand.hbm [shape: f32[3,3], index: 2, kind: output, shape index: {}]  }
   0x1   :  { %v12_v0 = vld [vmem:[%s90_s0] sm:$0x7] }
   0x2   :  { %v13_v1 = vld [vmem:[%s91_s1] sm:$0x7] }
   0x3   :  { %v14_v2 = vmul.f32 %v13_v1, %v12_v0 }
   0x4   :  { %7 = vsyncpa [#allocation3], 0  ;;  %s56_s13 = smov [#allocation2]  }
   0x5   :  { %s23_s14 = sshll.u32 %s56_s13, 4  ;;  %16 = vst.msk [vmem:[#allocation2] sm:$0x7] %vm15_vm0, %v14_v2  ;;  %s24_s14 = int_to_ptr.vmem [resolvable:$true] %s23_s14 }
   0x6   :  { %s32_s15 = scalar_lea.vmem %s24_s14, 64  ;;  %p37_p1 = scmp.lt.s32.totalorder %s24_s14, %s24_s14 }
   0x7   :  { %p33_p0 = scmp.ne.s32.totalorder %s24_s14, %s32_s15  ;;  %p38_p2 = scmp.lt.s32.totalorder %s32_s15, %s32_s15 }
   0x9   :  { %p39_p3 = por %p38_p2, %p37_p1 }
   0xb   :  { %p40_p4 = pnand %p39_p3, %p33_p0 }
   0xd   :  { %43 = shalt.err (!%p40_p4)
}
   0xe   :  { %s44_s17 = scalar_lea.hbm %s92_s2, 64 }
   0xf   :  { %p45_p5 = scmp.ne.s32.totalorder %s92_s2, %s44_s17  ;;  %p48_p6 = scmp.lt.u32.totalorder %s44_s17, %s92_s2 }
  0x11   :  { %p50_p7 = pnand %p48_p6, %p45_p5 }
  0x13   :  { %53 = shalt.err (!%p50_p7)
}
  0x14   :  { %26 = dma.vmem_to_hbm [thread:$0]  %s24_s14, 64, %s92_s2, [#allocation3]  }
  0x15   :  { %54 = dma.done.wait [#allocation3], 64  }
  0x16   :  { %55 = vsyncadd [#allocation3], 4294967232 }
  0x17   :  { %30 = vsyncpa [#allocation3], 1 }

</bundles_post_ra>
